<compile_context>
chip_gen: v6e
topology: v6e:2x2x1
jax: 0.10.0
libtpu: 0.0.40
codegen_flags: <defaults>
</compile_context>

<pallas_src>
import functools
import math

import jax
import jax.numpy as jnp
import numpy as np
from jax.experimental import pallas as pl
from jax.experimental.pallas import tpu as pltpu


def _cdiv(a, b):
    return -(-a // b)


def _round_up(x, m):
    return _cdiv(x, m) * m


def _round_down(x, m):
    return (x // m) * m


def _vmem_capacity_bytes():
    try:
        info = pltpu.get_tpu_info()
        cap = getattr(info, "vmem_capacity_bytes", None)
        if cap:
            return int(cap)
    except Exception:
        pass
    return 64 * 1024 * 1024   # conservative: assume v7x-class VMEM


def _label_smoothing_kl_kernel(
    logp_ref, tgt_ref, out_ref, *,
    batch, n_classes, tile_b, tile_v,
    smoothing_value, confidence, log_smoothing, log_confidence,
    ignore_index, mask_rows, mask_cols,
):
    i = pl.program_id(0)          # batch tile ("parallel")
    j = pl.program_id(1)          # vocab tile (reduction axis, "arbitrary")

    logp = logp_ref[...].astype(jnp.float32)               # (tile_b, tile_v)
    tgt = tgt_ref[...]                                      # (tile_b, 1) int32

    off = j * tile_v                                        # scalar offset
    col = jax.lax.broadcasted_iota(jnp.int32, (tile_b, tile_v), 1)

    # p takes only two values; p and p*log(p) are trace-time constants, so the
    # KL term is 1 cmp + 2 select + 1 mul + 1 sub per vreg (no exp/log).
    is_tgt = col == (tgt - off)                             # offset folded into comparand
    p = jnp.where(is_tgt, confidence, smoothing_value)
    plogp = jnp.where(is_tgt, confidence * log_confidence,
                      smoothing_value * log_smoothing)
    kl = plogp - p * logp

    # Column validity per-vreg: ignore_index column + padded cols on edge tiles.
    col_valid = col != (ignore_index - off)
    if mask_cols:
        col_valid &= col < (n_classes - off)
    # Row validity on a (tile_b, 1) tensor, broadcast-ANDed once per vreg.
    row_valid = tgt != ignore_index
    if mask_rows:
        row = jax.lax.broadcasted_iota(jnp.int32, (tile_b, 1), 0) + i * tile_b
        row_valid &= row < batch
    kl = jnp.where(col_valid & row_valid, kl, 0.0)

    # One lane reduce per vocab step (idle XLU); per-row partials accumulate
    # directly in the resident output block -- no full-tile scratch.
    partial = jnp.sum(kl, axis=-1, keepdims=True)           # (tile_b, 1) f32

    @pl.when(j == 0)
    def _():
        out_ref[...] = partial                              # direct write, no zero-fill

    @pl.when(j > 0)
    def _():
        out_ref[...] += partial


def label_smoothing_loss(output, target, *, label_smoothing, tgt_vocab_size,
                         ignore_index, tile_b=None, tile_v=None):
    """output: (B, V) log-probs (f32 or bf16), target: (B,) int -> scalar loss."""
    assert 0.0 < label_smoothing <= 1.0
    B, V = output.shape
    assert V == tgt_vocab_size

    smoothing_value = label_smoothing / (tgt_vocab_size - 2)
    confidence = 1.0 - label_smoothing
    log_smoothing = math.log(smoothing_value)
    log_confidence = math.log(confidence) if confidence > 0.0 else 0.0

    itemsize = output.dtype.itemsize
    row_align = {4: 8, 2: 16, 1: 32}.get(itemsize, 8)

    # Generation-aware tiling: v7x has 64 MiB VMEM + 2 TensorCores; v5e/v6e
    # have 128 MiB and are HBM-bound (bigger blocks amortize grid-step cost).
    vmem_cap = _vmem_capacity_bytes()
    small_vmem = vmem_cap <= 96 * 1024 * 1024
    vmem_limit = (48 if small_vmem else 96) * 1024 * 1024
    block_budget = (4 if small_vmem else 16) * 1024 * 1024   # per input buffer

    # Always lane-dense (multiple of 128) vocab tiles; never fall back to an
    # unaligned full V -- the in-kernel masks handle partial edge tiles.
    if tile_v is None:
        tile_v = min(2048 if small_vmem else 4096, _round_up(V, 128))
    if tile_b is None:
        max_tb = max(row_align,
                     _round_down(block_budget // (tile_v * itemsize), row_align))
        if small_vmem:
            # keep >=2 batch blocks so both v7x TensorCores get work
            tb_target = _round_up(_cdiv(B, 2), row_align)
        else:
            tb_target = _round_up(B, row_align)
        tile_b = max(row_align, min(max_tb, tb_target))

    nb = _cdiv(B, tile_b)
    nv = _cdiv(V, tile_v)

    tgt2d = target.astype(jnp.int32).reshape(-1, 1)

    kernel = functools.partial(
        _label_smoothing_kl_kernel,
        batch=B, n_classes=V, tile_b=tile_b, tile_v=tile_v,
        smoothing_value=float(smoothing_value), confidence=float(confidence),
        log_smoothing=float(log_smoothing), log_confidence=float(log_confidence),
        ignore_index=int(ignore_index),
        mask_rows=(nb * tile_b != B), mask_cols=(nv * tile_v != V),
    )

    cost = pl.CostEstimate(
        flops=8 * B * V,
        transcendentals=0,
        bytes_accessed=B * V * itemsize + B * 4 + nb * tile_b * 4,
    )

    partials = pl.pallas_call(
        kernel,
        out_shape=jax.ShapeDtypeStruct((nb * tile_b, 1), jnp.float32),
        grid_spec=pltpu.PrefetchScalarGridSpec(
            num_scalar_prefetch=0,
            grid=(nb, nv),
            in_specs=[
                pl.BlockSpec((tile_b, tile_v), lambda i, j: (i, j)),
                pl.BlockSpec((tile_b, 1), lambda i, j: (i, 0)),
            ],
            out_specs=pl.BlockSpec((tile_b, 1), lambda i, j: (i, 0)),
        ),
        compiler_params=pltpu.CompilerParams(
            dimension_semantics=("parallel", "arbitrary"),
            vmem_limit_bytes=vmem_limit,
        ),
        cost_estimate=cost,
    )(output, tgt2d)   # native dtype in; cast to f32 on the VMEM tile inside

    # Padded rows were zeroed inside the kernel, so a plain sum is exact.
    return jnp.sum(partials)


def _reference(output, target, *, label_smoothing, tgt_vocab_size, ignore_index):
    smoothing_value = label_smoothing / (tgt_vocab_size - 2)
    confidence = 1.0 - label_smoothing
    B = target.shape[0]
    one_hot = np.full((tgt_vocab_size,), smoothing_value, dtype=np.float32)
    one_hot[ignore_index] = 0.0
    prob = np.tile(one_hot[None, :], (B, 1))
    prob[np.arange(B), np.asarray(target)] = confidence
    prob[np.asarray(target) == ignore_index, :] = 0.0
    logp = np.asarray(output, dtype=np.float32)
    logprob = np.log(prob, where=prob > 0, out=np.zeros_like(prob))
    kl = np.where(prob > 0, prob * (logprob - logp), 0.0)
    return kl.sum()


def _run_case(key, batch, vocab, *, label_smoothing, ignore_index,
              tile_b=None, tile_v=None):
    k_logits, k_tgt = jax.random.split(key)
    logits = jax.random.normal(k_logits, (batch, vocab), dtype=jnp.float32)
    log_probs = jax.nn.log_softmax(logits, axis=-1)
    target = jax.random.randint(k_tgt, (batch,), 0, vocab, dtype=jnp.int32)
    target = target.at[batch // 2].set(ignore_index)   # exercise masked_fill_

    loss = label_smoothing_loss(
        log_probs, target,
        label_smoothing=label_smoothing, tgt_vocab_size=vocab,
        ignore_index=ignore_index, tile_b=tile_b, tile_v=tile_v,
    )
    loss = jax.block_until_ready(loss)
    ref = _reference(
        np.asarray(log_probs), np.asarray(target),
        label_smoothing=label_smoothing, tgt_vocab_size=vocab,
        ignore_index=ignore_index,
    )
    assert np.allclose(np.asarray(loss), ref, rtol=2e-5, atol=1e-5), (loss, ref)


if __name__ == "__main__":
    key = jax.random.PRNGKey(0)
    k0, k1, k2, k3 = jax.random.split(key, 4)

    # 1) module-sized demo, default (auto) tiles: V=32 is not a multiple of 128,
    #    so this exercises the rounded tile_v + in-kernel column masking path.
    _run_case(k0, batch=8, vocab=32, label_smoothing=0.1, ignore_index=0)

    # 2) multi-tile grid (2x2) with forced tile sizes: exercises accumulation
    #    across vocab tiles and the "parallel" batch axis.
    _run_case(k1, batch=16, vocab=256, label_smoothing=0.1, ignore_index=0,
              tile_b=8, tile_v=128)

    # 3) partial edge tiles on both axes (forced tiles): row + column masking.
    _run_case(k2, batch=12, vocab=192, label_smoothing=0.2, ignore_index=0,
              tile_b=8, tile_v=128)

    # 4) unaligned batch and vocab with default (auto) tile selection.
    _run_case(k3, batch=10, vocab=200, label_smoothing=0.15, ignore_index=0)

    print("KERNEL_OK")
</pallas_src>

<mosaic_0001>
module attributes {stable_mosaic.version = 11 : i64} {
  func.func @_label_smoothing_kl_kernel(%arg0: i32, %arg1: i32, %arg2: memref<8x128xf32, #tpu.memory_space<vmem>>, %arg3: memref<8x1xi32, #tpu.memory_space<vmem>>, %arg4: memref<8x1xf32, #tpu.memory_space<vmem>>) attributes {dimension_semantics = [#tpu.dimension_semantics<parallel>, #tpu.dimension_semantics<arbitrary>], iteration_bounds = array<i64: 1, 1>, scalar_prefetch = 0 : i64, scratch_operands = 0 : i64, tpu.core_type = #tpu.core_type<tc>, window_params = [{transform_indices = @transform_0, window_bounds = array<i64: 8, 128>}, {transform_indices = @transform_1, window_bounds = array<i64: 8, 1>}, {transform_indices = @transform_2, window_bounds = array<i64: 8, 1>}]} {
    %c0 = arith.constant 0 : index
    %c0_0 = arith.constant 0 : index
    %0 = vector.load %arg2[%c0, %c0_0] : memref<8x128xf32, #tpu.memory_space<vmem>>, vector<8x128xf32>
    %c0_1 = arith.constant 0 : index
    %c0_2 = arith.constant 0 : index
    %1 = vector.load %arg3[%c0_1, %c0_2] : memref<8x1xi32, #tpu.memory_space<vmem>>, vector<8x1xi32>
    %c128_i32 = arith.constant 128 : i32
    %2 = arith.muli %arg1, %c128_i32 : i32
    %3 = tpu.iota {dimensions = array<i32: 1>} : vector<8x128xi32>
    %4 = vector.broadcast %2 : i32 to vector<8x1xi32>
    %5 = arith.subi %1, %4 : vector<8x1xi32>
    %6 = vector.broadcast %5 : vector<8x1xi32> to vector<8x128xi32>
    %7 = arith.cmpi eq, %3, %6 : vector<8x128xi32>
    %cst = arith.constant 0.899999976 : f32
    %cst_3 = arith.constant 0.00333333341 : f32
    %8 = vector.broadcast %cst : f32 to vector<8x128xf32>
    %9 = vector.broadcast %cst_3 : f32 to vector<8x128xf32>
    %10 = arith.select %7, %8, %9 : vector<8x128xi1>, vector<8x128xf32>
    %cst_4 = arith.constant -0.0948244631 : f32
    %cst_5 = arith.constant -0.0190126076 : f32
    %11 = vector.broadcast %cst_4 : f32 to vector<8x128xf32>
    %12 = vector.broadcast %cst_5 : f32 to vector<8x128xf32>
    %13 = arith.select %7, %11, %12 : vector<8x128xi1>, vector<8x128xf32>
    %14 = arith.mulf %10, %0 : vector<8x128xf32>
    %15 = arith.subf %13, %14 : vector<8x128xf32>
    %c0_i32 = arith.constant 0 : i32
    %16 = arith.subi %c0_i32, %2 : i32
    %17 = vector.broadcast %16 : i32 to vector<8x128xi32>
    %18 = arith.cmpi ne, %3, %17 : vector<8x128xi32>
    %c32_i32 = arith.constant 32 : i32
    %19 = arith.subi %c32_i32, %2 : i32
    %20 = vector.broadcast %19 : i32 to vector<8x128xi32>
    %21 = arith.cmpi slt, %3, %20 : vector<8x128xi32>
    %22 = arith.andi %18, %21 : vector<8x128xi1>
    %c0_i32_6 = arith.constant 0 : i32
    %23 = vector.broadcast %c0_i32_6 : i32 to vector<8x1xi32>
    %24 = arith.cmpi ne, %1, %23 : vector<8x1xi32>
    %25 = vector.broadcast %24 : vector<8x1xi1> to vector<8x128xi1>
    %26 = arith.andi %22, %25 : vector<8x128xi1>
    %cst_7 = arith.constant 0.000000e+00 : f32
    %27 = vector.broadcast %cst_7 : f32 to vector<8x128xf32>
    %28 = arith.select %26, %15, %27 : vector<8x128xi1>, vector<8x128xf32>
    %cst_8 = arith.constant dense<0.000000e+00> : vector<8xf32>
    %29 = vector.multi_reduction <add>, %28, %cst_8 [1] : vector<8x128xf32> to vector<8xf32>
    %30 = vector.shape_cast %29 : vector<8xf32> to vector<8x1xf32>
    %c0_i32_9 = arith.constant 0 : i32
    %31 = arith.cmpi eq, %arg1, %c0_i32_9 : i32
    %32 = arith.extui %31 : i1 to i32
    %c0_i32_10 = arith.constant 0 : i32
    %33 = arith.cmpi ne, %32, %c0_i32_10 : i32
    scf.if %33 {
      %c0_13 = arith.constant 0 : index
      %c0_14 = arith.constant 0 : index
      %37 = vector.load %arg4[%c0_13, %c0_14] : memref<8x1xf32, #tpu.memory_space<vmem>>, vector<8x1xf32>
      tpu.vector_store %arg4[%c0_13, %c0_14], %30 {strides = array<i32>} : memref<8x1xf32, #tpu.memory_space<vmem>>, vector<8x1xf32>,
    } else {
    }
    %c0_i32_11 = arith.constant 0 : i32
    %34 = arith.cmpi sgt, %arg1, %c0_i32_11 : i32
    %35 = arith.extui %34 : i1 to i32
    %c0_i32_12 = arith.constant 0 : i32
    %36 = arith.cmpi ne, %35, %c0_i32_12 : i32
    scf.if %36 {
      %c0_13 = arith.constant 0 : index
      %c0_14 = arith.constant 0 : index
      %37 = vector.load %arg4[%c0_13, %c0_14] : memref<8x1xf32, #tpu.memory_space<vmem>>, vector<8x1xf32>
      %38 = arith.addf %37, %30 : vector<8x1xf32>
      %c0_15 = arith.constant 0 : index
      %c0_16 = arith.constant 0 : index
      %39 = vector.load %arg4[%c0_15, %c0_16] : memref<8x1xf32, #tpu.memory_space<vmem>>, vector<8x1xf32>
      tpu.vector_store %arg4[%c0_15, %c0_16], %38 {strides = array<i32>} : memref<8x1xf32, #tpu.memory_space<vmem>>, vector<8x1xf32>,
    } else {
    }
    return
  }
  func.func @transform_0(%arg0: i32, %arg1: i32) -> (i32, i32) {
    %c0_i32 = arith.constant 0 : i32
    return %arg0, %arg1 : i32, i32
  }
  func.func @transform_1(%arg0: i32, %arg1: i32) -> (i32, i32) {
    %c0_i32 = arith.constant 0 : i32
    %c0_i32_0 = arith.constant 0 : i32
    return %arg0, %c0_i32 : i32, i32
  }
  func.func @transform_2(%arg0: i32, %arg1: i32) -> (i32, i32) {
    %c0_i32 = arith.constant 0 : i32
    %c0_i32_0 = arith.constant 0 : i32
    return %arg0, %c0_i32 : i32, i32
  }
}

</mosaic_0001>

<bundles_post_ra>
// kernel: tpu_custom_call.1
= control target key start
LH: loop header
LB: loop body
LE: loop exit
PB: predicated region body
PF: predicated region fallthrough
CT: control target
= control target key end

     0   :  { %v65_v0 = vmov 0   ;;  %v14_v3 = vlaneseq  ;;  %v66_v7 = vmov 0.0033333334   ;;  %v67_v10 = vmov -0.019012608   ;;  %s92_s1 = inlined_call_operand.vmem [shape: s32[8,1], index: 1, kind: input, shape index: {}]   ;;  %s93_s0 = inlined_call_operand.vmem [shape: f32[8,32], index: 0, kind: input, shape index: {}]   ;;  %s94_s2 = inlined_call_operand.vmem [shape: f32[8,1], index: 2, kind: output, shape index: {}]  }
   0x1   :  { %64 = vset.pattern.permute.xlu0 %v65_v0  ;;  %v12_v1 = vld [vmem:[%s92_s1] sm:$0xff]  ;;  %vm47_vm7 = vcmask 7168  }
   0x2   :  { %19 = vperm.xlu0 %64, %v12_v1   ;;  %vm33_vm0 = vcmp.ne.s32.totalorder %v12_v1, 0  ;;  %v15_v4 = vand.u32 127, %v14_v3  ;;  %v11_v6 = vld [vmem:[%s93_s0] sm:$0xff] }
   0x3   :  { %v34_v2 = vsel %vm33_vm0, 1, %v65_v0 }
   0x4   :  { %vm28_vm1 = vcmp.ne.s32.totalorder %v15_v4, 0  ;;  %vm31_vm2 = vcmp.lt.s32.totalorder %v15_v4, 32 }
   0x5   :  { %vm32_vm4 = vmand %vm28_vm1, %vm31_vm2 }
   0x6   :  { %36 = vperm.xlu0 %64, %v34_v2  }
  0x7d   :  { %v20_v5 = vpop.permute.xlu0 %19 }
  0x7e   :  { %vm21_vm3 = vcmp.eq.s32.totalorder %v15_v4, %v20_v5 }
  0x7f   :  { %v22_v8 = vsel %vm21_vm3, 0.9, %v66_v7  ;;  %v23_v11 = vsel %vm21_vm3, -0.09482446, %v67_v10 }
  0x80   :  { %v24_v9 = vmul.f32 %v22_v8, %v11_v6 }
  0x81   :  { %v37_v12 = vpop.permute.xlu0 %36 }
  0x82   :  { %vm38_vm5 = vcmp.eq.s32.totalorder %v37_v12, 1  ;;  %v25_v13 = vsub.f32 %v23_v11, %v24_v9 }
  0x83   :  { %vm39_vm6 = vmand %vm32_vm4, %vm38_vm5 }
  0x84   :  { %v40_v14 = vsel %vm39_vm6, %v25_v13, 0.0 }
  0x85   :  { %41 = vadd.xlane.f32.xlu1 %v40_v14 }
 0x10e   :  { %v42_v15 = vpop.xlane.xlu1 %41 }
 0x10f   :  { %48 = vst.msk [vmem:[%s94_s2] sm:$0xff] %vm47_vm7, %v42_v15 }

</bundles_post_ra>
